<compile_context>
chip_gen: v6e
topology: v6e:2x2x1
jax: 0.10.0
libtpu: 0.0.40
codegen_flags: <defaults>
</compile_context>

<pallas_src>
import math
import functools

import jax
import jax.numpy as jnp
from jax.experimental import pallas as pl
from jax.experimental.pallas import tpu as pltpu

PAD = 0


# ----------------------------------------------------------------------------
# Pallas kernels
# ----------------------------------------------------------------------------
def _matmul_kernel(x_ref, w_ref, o_ref):
    o_ref[...] = jnp.dot(
        x_ref[...], w_ref[...], preferred_element_type=jnp.float32
    ).astype(o_ref.dtype)


def matmul_pallas(x, w, tm=256):
    """x: (M, K), w: (K, N) -> (M, N); tiled over M, weights whole-block."""
    M, K = x.shape
    N = w.shape[1]
    tm = min(tm, M)
    return pl.pallas_call(
        _matmul_kernel,
        out_shape=jax.ShapeDtypeStruct((M, N), jnp.float32),
        grid=(pl.cdiv(M, tm),),
        in_specs=[
            pl.BlockSpec((tm, K), lambda i: (i, 0)),
            pl.BlockSpec((K, N), lambda i: (0, 0)),
        ],
        out_specs=pl.BlockSpec((tm, N), lambda i: (i, 0)),
        compiler_params=pltpu.CompilerParams(dimension_semantics=("parallel",)),
    )(x, w)


def _mix_attn_kernel(gate_ref, qw_ref, k_ref, v_ref, bias_ref, wo_ref,
                     res_ref, lng_ref, lnb_ref, npm_ref,
                     out_ref, attn_ref, *, n_head, d_head, avg, use_gate):
    """Per-batch fused attention sublayer.

    qw_ref : (Lq, H*dh)  query proj with r_w_bias and 1/sqrt(dh) pre-folded
    k_ref  : (Lk, H*dh)  key proj
    v_ref  : (Lk, H*dh)  value proj
    bias   : (H, Lq, Lk) shifted BD term + additive mask (0 / -1e30)
    gate   : (B, H) in SMEM, dialogue-act head gate
    wo_ref : (dh | H*dh, d_model) output projection
    res/ln/npm : residual, LayerNorm params, non-pad mask
    """
    b = pl.program_id(0)
    heads = []
    for h in range(n_head):
        lo = h * d_head
        qh = qw_ref[:, lo:lo + d_head]                 # (Lq, dh)
        kh = k_ref[:, lo:lo + d_head]                  # (Lk, dh)
        vh = v_ref[:, lo:lo + d_head]                  # (Lk, dh)
        s = jnp.dot(qh, kh.T, preferred_element_type=jnp.float32)
        s = s + bias_ref[h]                            # content + position + mask
        s = s - jnp.max(s, axis=-1, keepdims=True)
        e = jnp.exp(s)
        prob = e * pl.reciprocal(jnp.sum(e, axis=-1, keepdims=True), approx=True)
        attn_ref[h] = prob
        o = jnp.dot(prob, vh, preferred_element_type=jnp.float32)   # (Lq, dh)
        if use_gate:
            o = o * gate_ref[b, h]                     # da-gating, SMEM scalar
        heads.append(o)

    if avg:
        comb = heads[0]
        for t in heads[1:]:
            comb = comb + t                            # da-weighted head sum
    else:
        comb = jnp.concatenate(heads, axis=-1)         # head concat

    proj = jnp.dot(comb, wo_ref[...], preferred_element_type=jnp.float32)
    x = proj + res_ref[...]                            # post-LN residual
    mu = jnp.mean(x, axis=-1, keepdims=True)
    var = jnp.mean(jnp.square(x - mu), axis=-1, keepdims=True)
    y = (x - mu) * jax.lax.rsqrt(var + 1e-5)
    y = y * lng_ref[...] + lnb_ref[...]
    out_ref[...] = (y * npm_ref[...]).astype(out_ref.dtype)


def mix_attn_pallas(gate, q_w, k_p, v_p, bias, w_o, residual, ln_g, ln_b,
                    non_pad, *, n_head, d_head, avg, use_gate):
    B, Lq, HD = q_w.shape
    Lk = k_p.shape[1]
    dm = residual.shape[-1]
    kern = functools.partial(_mix_attn_kernel, n_head=n_head, d_head=d_head,
                             avg=avg, use_gate=use_gate)
    return pl.pallas_call(
        kern,
        out_shape=(jax.ShapeDtypeStruct((B, Lq, dm), jnp.float32),
                   jax.ShapeDtypeStruct((B, n_head, Lq, Lk), jnp.float32)),
        grid=(B,),
        in_specs=[
            pl.BlockSpec(memory_space=pltpu.MemorySpace.SMEM),       # gate (B,H)
            pl.BlockSpec((None, Lq, HD), lambda b: (b, 0, 0)),       # q_w
            pl.BlockSpec((None, Lk, HD), lambda b: (b, 0, 0)),       # k
            pl.BlockSpec((None, Lk, HD), lambda b: (b, 0, 0)),       # v
            pl.BlockSpec((None, n_head, Lq, Lk), lambda b: (b, 0, 0, 0)),  # bias
            pl.BlockSpec((w_o.shape[0], dm), lambda b: (0, 0)),      # w_o
            pl.BlockSpec((None, Lq, dm), lambda b: (b, 0, 0)),       # residual
            pl.BlockSpec((1, dm), lambda b: (0, 0)),                 # ln_g
            pl.BlockSpec((1, dm), lambda b: (0, 0)),                 # ln_b
            pl.BlockSpec((None, Lq, 1), lambda b: (b, 0, 0)),        # non_pad
        ],
        out_specs=(
            pl.BlockSpec((None, Lq, dm), lambda b: (b, 0, 0)),       # lane-dense
            pl.BlockSpec((None, n_head, Lq, Lk), lambda b: (b, 0, 0, 0)),
        ),
        compiler_params=pltpu.CompilerParams(dimension_semantics=("parallel",)),
    )(gate, q_w, k_p, v_p, bias, w_o, residual, ln_g, ln_b, non_pad)


def _ffn_ln_kernel(x_ref, w1_ref, b1_ref, w2_ref, b2_ref, lng_ref, lnb_ref,
                   npm_ref, o_ref):
    x = x_ref[...]
    h = jnp.dot(x, w1_ref[...], preferred_element_type=jnp.float32) + b1_ref[...]
    h = jnp.maximum(h, 0.0)
    core = jnp.dot(h, w2_ref[...], preferred_element_type=jnp.float32) + b2_ref[...]
    y = core + x                                       # post-LN residual
    mu = jnp.mean(y, axis=-1, keepdims=True)
    var = jnp.mean(jnp.square(y - mu), axis=-1, keepdims=True)
    y = (y - mu) * jax.lax.rsqrt(var + 1e-5)
    y = y * lng_ref[...] + lnb_ref[...]
    o_ref[...] = (y * npm_ref[...]).astype(o_ref.dtype)


def pos_ffn_pallas(x2d, ffn_p, np2d, tm=256):
    M, D = x2d.shape
    Di = ffn_p["w1"].shape[1]
    tm = min(tm, M)
    return pl.pallas_call(
        _ffn_ln_kernel,
        out_shape=jax.ShapeDtypeStruct((M, D), jnp.float32),
        grid=(pl.cdiv(M, tm),),
        in_specs=[
            pl.BlockSpec((tm, D), lambda i: (i, 0)),
            pl.BlockSpec((D, Di), lambda i: (0, 0)),
            pl.BlockSpec((1, Di), lambda i: (0, 0)),
            pl.BlockSpec((Di, D), lambda i: (0, 0)),
            pl.BlockSpec((1, D), lambda i: (0, 0)),
            pl.BlockSpec((1, D), lambda i: (0, 0)),
            pl.BlockSpec((1, D), lambda i: (0, 0)),
            pl.BlockSpec((tm, 1), lambda i: (i, 0)),
        ],
        out_specs=pl.BlockSpec((tm, D), lambda i: (i, 0)),
        compiler_params=pltpu.CompilerParams(dimension_semantics=("parallel",)),
    )(x2d, ffn_p["w1"], ffn_p["b1"], ffn_p["w2"], ffn_p["b2"],
      ffn_p["ln_g"], ffn_p["ln_b"], np2d)


# ----------------------------------------------------------------------------
# Glue (positional embeddings, score-space rel-shift, parameter plumbing)
# ----------------------------------------------------------------------------
def positional_embedding(pos_seq, demb):
    inv_freq = 1.0 / (10000.0 ** (jnp.arange(0, demb, 2, dtype=jnp.float32) / demb))
    sinusoid = pos_seq[:, None] * inv_freq[None, :]
    return jnp.concatenate([jnp.sin(sinusoid), jnp.cos(sinusoid)], axis=-1)


def encoder_layer_forward(p, q_in, k_in, v_in, da, slf_attn_mask, non_pad_mask,
                          *, n_head, d_head, avg, rel=True):
    """EncoderLayer.forward(q, k, v, da, slf_attn_mask, non_pad_mask)."""
    B, Lq, dm = q_in.shape
    Lk = k_in.shape[1]
    H, dh = n_head, d_head
    scale = 1.0 / math.sqrt(dh)
    rlen = Lk + Lq - 1

    # ---- fused q/k/v projections -------------------------------------------
    q2 = q_in.reshape(B * Lq, dm)
    if (q_in is k_in) and (k_in is v_in):
        qkv = matmul_pallas(q2, jnp.concatenate([p["w_q"], p["w_k"], p["w_v"]],
                                                axis=1))
        q_proj = qkv[:, :H * dh]
        k_proj = qkv[:, H * dh:2 * H * dh]
        v_proj = qkv[:, 2 * H * dh:]
    else:
        q_proj = matmul_pallas(q2, p["w_q"])
        k2 = k_in.reshape(B * Lk, dm)
        if k_in is v_in:
            kv = matmul_pallas(k2, jnp.concatenate([p["w_k"], p["w_v"]], axis=1))
            k_proj, v_proj = kv[:, :H * dh], kv[:, H * dh:]
        else:
            k_proj = matmul_pallas(k2, p["w_k"])
            v_proj = matmul_pallas(v_in.reshape(B * Lk, dm), p["w_v"])
    q_proj = q_proj.reshape(B, Lq, H * dh)
    k_proj = k_proj.reshape(B, Lk, H * dh)
    v_proj = v_proj.reshape(B, Lk, H * dh)

    # ---- relative-position BD term in score space ---------------------------
    if rel:
        pos_seq = jnp.arange(Lk - 1, -Lq, -1.0, dtype=jnp.float32)
        pos_emb = positional_embedding(pos_seq, dm)                  # (rlen, dm)
        rh = matmul_pallas(pos_emb, p["w_r"]).reshape(rlen, H, dh)
        q_r = (q_proj.reshape(B, Lq, H, dh) + p["r_r_bias"][None, None]) * scale
        bd_full = jnp.einsum("bqhd,rhd->bhqr", q_r, rh)              # MXU matmul
        # Transformer-XL rel-shift on the score matrix: rel = i - j,
        # pos_seq[m] = (Lk-1) - m  ->  m = (Lk-1) - i + j.
        idx = (Lk - 1) - jnp.arange(Lq)[:, None] + jnp.arange(Lk)[None, :]
        idx = jnp.clip(idx, 0, rlen - 1).astype(jnp.int32)
        bias = jnp.take_along_axis(
            bd_full, jnp.broadcast_to(idx[None, None], (B, H, Lq, Lk)), axis=-1)
        q_w = (q_proj + p["r_w_bias"].reshape(1, 1, H * dh)) * scale
    else:
        bias = jnp.zeros((B, H, Lq, Lk), jnp.float32)
        q_w = q_proj * scale

    if slf_attn_mask is not None:                      # additive mask (0 / -1e30)
        bias = bias + (-1e30) * slf_attn_mask[:, None, :, :].astype(jnp.float32)

    use_gate = bool(avg and (da is not None))
    gate = (da.astype(jnp.float32) if use_gate
            else jnp.ones((B, H), jnp.float32))

    out, attn = mix_attn_pallas(
        gate, q_w, k_proj, v_proj, bias, p["w_o"], q_in, p["ln_g"], p["ln_b"],
        non_pad_mask, n_head=H, d_head=dh, avg=avg, use_gate=use_gate)

    out2 = pos_ffn_pallas(out.reshape(B * Lq, dm), p["ffn"],
                          non_pad_mask.reshape(B * Lq, 1))
    return out2.reshape(B, Lq, dm), attn


# ----------------------------------------------------------------------------
# Pure-JAX reference (for a tolerance check in __main__)
# ----------------------------------------------------------------------------
def _ln_ref(x, g, b, eps=1e-5):
    mu = jnp.mean(x, axis=-1, keepdims=True)
    var = jnp.mean(jnp.square(x - mu), axis=-1, keepdims=True)
    return (x - mu) * jax.lax.rsqrt(var + eps) * g + b


def encoder_layer_reference(p, q_in, k_in, v_in, da, attn_mask, non_pad,
                            *, n_head, d_head, avg):
    B, Lq, dm = q_in.shape
    Lk = k_in.shape[1]
    H, dh = n_head, d_head
    scale = 1.0 / math.sqrt(dh)
    rlen = Lq + Lk - 1
    qh = (q_in.reshape(B * Lq, dm) @ p["w_q"]).reshape(B, Lq, H, dh)
    kh = (k_in.reshape(B * Lk, dm) @ p["w_k"]).reshape(B, Lk, H, dh)
    vh = (v_in.reshape(B * Lk, dm) @ p["w_v"]).reshape(B, Lk, H, dh)
    pos = positional_embedding(jnp.arange(Lk - 1, -Lq, -1.0, dtype=jnp.float32), dm)
    rh = (pos @ p["w_r"]).reshape(rlen, H, dh)
    idx = jnp.clip((Lk - 1) - jnp.arange(Lq)[:, None] + jnp.arange(Lk)[None, :],
                   0, rlen - 1)
    r_sh = rh[idx]                                              # (Lq, Lk, H, dh)
    ac = jnp.einsum("bqhd,bkhd->bhqk", qh + p["r_w_bias"][None, None], kh)
    bd = jnp.einsum("bqhd,qkhd->bhqk", qh + p["r_r_bias"][None, None], r_sh)
    s = (ac + bd) * scale
    s = jnp.where(attn_mask[:, None] > 0, -1e30, s)
    prob = jax.nn.softmax(s, axis=-1)
    o = jnp.einsum("bhqk,bkhd->bhqd", prob, vh)
    gate = (da if (avg and da is not None) else jnp.ones((B, H), jnp.float32))
    o = o * gate[:, :, None, None]
    comb = o.sum(axis=1) if avg else o.transpose(0, 2, 1, 3).reshape(B, Lq, H * dh)
    out = _ln_ref(comb @ p["w_o"] + q_in, p["ln_g"], p["ln_b"]) * non_pad
    core = (jnp.maximum(out.reshape(B * Lq, dm) @ p["ffn"]["w1"] + p["ffn"]["b1"],
                        0.0) @ p["ffn"]["w2"] + p["ffn"]["b2"]).reshape(B, Lq, dm)
    out2 = _ln_ref(core + out, p["ffn"]["ln_g"], p["ffn"]["ln_b"]) * non_pad
    return out2, prob


# ----------------------------------------------------------------------------
# Deterministic parameter init
# ----------------------------------------------------------------------------
def _nrm(key, shape, std=0.02):
    return std * jax.random.normal(key, shape, dtype=jnp.float32)


def init_encoder_layer_params(key, d_model, d_inner, n_head, d_head, avg):
    ks = jax.random.split(key, 9)
    o_in = d_head if avg else n_head * d_head
    return {
        "w_q": _nrm(ks[0], (d_model, n_head * d_head)),
        "w_k": _nrm(ks[1], (d_model, n_head * d_head)),
        "w_v": _nrm(ks[2], (d_model, n_head * d_head)),
        "w_r": _nrm(ks[3], (d_model, n_head * d_head)),
        "w_o": _nrm(ks[4], (o_in, d_model)),
        "ln_g": jnp.ones((1, d_model), jnp.float32),
        "ln_b": jnp.zeros((1, d_model), jnp.float32),
        "r_w_bias": 0.1 * jax.random.normal(ks[5], (n_head, d_head), jnp.float32),
        "r_r_bias": 0.1 * jax.random.normal(ks[6], (n_head, d_head), jnp.float32),
        "ffn": {
            "w1": _nrm(ks[7], (d_model, d_inner)),
            "b1": jnp.zeros((1, d_inner), jnp.float32),
            "w2": _nrm(ks[8], (d_inner, d_model)),
            "b2": jnp.zeros((1, d_model), jnp.float32),
            "ln_g": jnp.ones((1, d_model), jnp.float32),
            "ln_b": jnp.zeros((1, d_model), jnp.float32),
        },
    }


if __name__ == "__main__":
    B, L = 2, 8
    d_model, d_head, d_inner, n_head = 32, 8, 64, 4

    root = jax.random.PRNGKey(0)
    k_p1, k_p2, k_x, k_da = jax.random.split(root, 4)

    params_avg = init_encoder_layer_params(k_p1, d_model, d_inner, n_head,
                                           d_head, avg=True)
    params_cat = init_encoder_layer_params(k_p2, d_model, d_inner, n_head,
                                           d_head, avg=False)

    seq = jnp.array([[3, 5, 7, 2, 9, 4, 0, 0],
                     [6, 1, 8, 3, 0, 0, 0, 0]], dtype=jnp.int32)
    non_pad_mask = (seq != PAD).astype(jnp.float32)[:, :, None]
    slf_attn_mask = jnp.broadcast_to(
        (seq == PAD).astype(jnp.float32)[:, None, :], (B, L, L))

    x = jax.random.normal(k_x, (B, L, d_model), dtype=jnp.float32)
    da = (jax.random.uniform(k_da, (B, n_head)) > 0.5).astype(jnp.float32)

    # avg=True encoder layer (dialogue-act gated head sum)
    out1, attn1 = encoder_layer_forward(
        params_avg, x, x, x, da, slf_attn_mask, non_pad_mask,
        n_head=n_head, d_head=d_head, avg=True)
    # avg=False encoder layer (head concat, da=None)
    out2, attn2 = encoder_layer_forward(
        params_cat, out1, out1, out1, None, slf_attn_mask, non_pad_mask,
        n_head=n_head, d_head=d_head, avg=False)
    out2 = jax.block_until_ready(out2)

    ref1, _ = encoder_layer_reference(
        params_avg, x, x, x, da, slf_attn_mask, non_pad_mask,
        n_head=n_head, d_head=d_head, avg=True)
    ref2, _ = encoder_layer_reference(
        params_cat, out1, out1, out1, None, slf_attn_mask, non_pad_mask,
        n_head=n_head, d_head=d_head, avg=False)

    assert out1.shape == (B, L, d_model) and attn1.shape == (B, n_head, L, L)
    assert out2.shape == (B, L, d_model) and attn2.shape == (B, n_head, L, L)
    assert bool(jnp.all(jnp.isfinite(out1))) and bool(jnp.all(jnp.isfinite(out2)))
    assert bool(jnp.allclose(out1, ref1, rtol=5e-2, atol=5e-2))
    assert bool(jnp.allclose(out2, ref2, rtol=5e-2, atol=5e-2))
    print("KERNEL_OK")
</pallas_src>

<mosaic_0001>
module attributes {stable_mosaic.version = 11 : i64} {
  func.func @_matmul_kernel(%arg0: i32, %arg1: memref<16x32xf32, #tpu.memory_space<vmem>>, %arg2: memref<32x96xf32, #tpu.memory_space<vmem>>, %arg3: memref<16x96xf32, #tpu.memory_space<vmem>>) attributes {dimension_semantics = [#tpu.dimension_semantics<parallel>], iteration_bounds = array<i64: 1>, scalar_prefetch = 0 : i64, scratch_operands = 0 : i64, tpu.core_type = #tpu.core_type<tc>, window_params = [{transform_indices = @transform_0, window_bounds = array<i64: 16, 32>}, {pipeline_mode = #tpu.pipeline_mode<synchronous>, transform_indices = @transform_1, window_bounds = array<i64: 32, 96>}, {transform_indices = @transform_2, window_bounds = array<i64: 16, 96>}]} {
    %c0 = arith.constant 0 : index
    %c0_0 = arith.constant 0 : index
    %0 = vector.load %arg1[%c0, %c0_0] : memref<16x32xf32, #tpu.memory_space<vmem>>, vector<16x32xf32>
    %c0_1 = arith.constant 0 : index
    %c0_2 = arith.constant 0 : index
    %1 = vector.load %arg2[%c0_1, %c0_2] : memref<32x96xf32, #tpu.memory_space<vmem>>, vector<32x96xf32>
    %cst = arith.constant dense<0.000000e+00> : vector<16x96xf32>
    %2 = tpu.matmul %0, %1, %cst {dimension_numbers = #tpu.dot_dimension_numbers<[1], [0], [0], [1], [0, 0, 1, 1], [], []>} : vector<16x32xf32>, vector<32x96xf32>, vector<16x96xf32> -> vector<16x96xf32>
    %c0_3 = arith.constant 0 : index
    %c0_4 = arith.constant 0 : index
    %3 = vector.load %arg3[%c0_3, %c0_4] : memref<16x96xf32, #tpu.memory_space<vmem>>, vector<16x96xf32>
    tpu.vector_store %arg3[%c0_3, %c0_4], %2 {strides = array<i32>} : memref<16x96xf32, #tpu.memory_space<vmem>>, vector<16x96xf32>,
    return
  }
  func.func @transform_0(%arg0: i32) -> (i32, i32) {
    %c0_i32 = arith.constant 0 : i32
    %c0_i32_0 = arith.constant 0 : i32
    return %arg0, %c0_i32 : i32, i32
  }
  func.func @transform_1(%arg0: i32) -> (i32, i32) {
    %c0_i32 = arith.constant 0 : i32
    %c0_i32_0 = arith.constant 0 : i32
    %c0_i32_1 = arith.constant 0 : i32
    return %c0_i32, %c0_i32_0 : i32, i32
  }
  func.func @transform_2(%arg0: i32) -> (i32, i32) {
    %c0_i32 = arith.constant 0 : i32
    %c0_i32_0 = arith.constant 0 : i32
    return %arg0, %c0_i32 : i32, i32
  }
}

</mosaic_0001>

<bundles_post_ra>
// kernel: tpu_custom_call.1
= control target key start
LH: loop header
LB: loop body
LE: loop exit
PB: predicated region body
PF: predicated region fallthrough
CT: control target
= control target key end

     0   :  { %7 = vsyncpa [#allocation3], 0  ;;  %s279_s0 = inlined_call_operand.hbm [shape: f32[16,32], index: 0, kind: input, shape index: {}]   ;;  %s280_s1 = inlined_call_operand.hbm [shape: f32[32,96], index: 1, kind: input, shape index: {}]   ;;  %s281_s2 = inlined_call_operand.hbm [shape: f32[16,96], index: 2, kind: output, shape index: {}]  }
   0x1   :  { %8 = vsyncpa [#allocation6], 0 }
   0x2   :  { %9 = vsyncpa [#allocation4], 0  ;;  %s239_s9 = smov [#allocation2]  }
   0x3   :  { %s15_s10 = sshll.u32 %s239_s9, 4  ;;  %s16_s10 = int_to_ptr.vmem [resolvable:$true] %s15_s10 }
   0x4   :  { %s181_s11 = scalar_lea.vmem %s16_s10, 256  ;;  %p186_p1 = scmp.lt.s32.totalorder %s16_s10, %s16_s10 }
   0x5   :  { %p182_p0 = scmp.ne.s32.totalorder %s16_s10, %s181_s11  ;;  %p187_p2 = scmp.lt.s32.totalorder %s181_s11, %s181_s11 }
   0x7   :  { %p188_p3 = por %p187_p2, %p186_p1 }
   0x9   :  { %p189_p4 = pnand %p188_p3, %p182_p0 }
   0xb   :  { %192 = shalt.err (!%p189_p4)
}
   0xc   :  { %s240_s12 = smov 128   ;;  %s241_s13 = smov 8  }
   0xd   :  { %21 = dma.hbm_to_vmem [thread:$0]  %s279_s0, 256, %s16_s10, [#allocation3], %s240_s12, %s240_s12, %s241_s13  }
   0xe   :  { %s242_s16 = smov [#allocation5]  }
   0xf   :  { %s27_s17 = sshll.u32 %s242_s16, 4  ;;  %s28_s17 = int_to_ptr.vmem [resolvable:$true] %s27_s17 }
  0x10   :  { %s201_s18 = scalar_lea.vmem %s28_s17, 512  ;;  %p206_p6 = scmp.lt.s32.totalorder %s28_s17, %s28_s17 }
  0x11   :  { %p202_p5 = scmp.ne.s32.totalorder %s28_s17, %s201_s18  ;;  %p207_p7 = scmp.lt.s32.totalorder %s201_s18, %s201_s18 }
  0x13   :  { %p208_p8 = por %p207_p7, %p206_p6 }
  0x15   :  { %p209_p9 = pnand %p208_p8, %p202_p5 }
  0x17   :  { %212 = shalt.err (!%p209_p9)
}
  0x18   :  { %33 = dma.hbm_to_vmem [thread:$0]  %s280_s1, 512, %s28_s17, [#allocation6], %s240_s12, %s240_s12, %s241_s13  }
  0x19   :  { %233 = dma.done.wait [#allocation3], 256  }
  0x1a   :  { %234 = vsyncadd [#allocation3], 4294967040 }
  0x1b   :  { %235 = dma.done.wait [#allocation6], 512  }
  0x1c   :  { %236 = vsyncadd [#allocation6], 4294966784  ;;  %vm46_vm0 = vcmask 261120   ;;  %v45_v0 = vld [vmem:[#allocation5 + $0x18] sm:$0xff]  ;;  %v44_v1 = vld [vmem:[#allocation5 + $0x10] sm:$0xff]  ;;  %vm128_vm1 = vcmask 785408  }
  0x1d   :  { %157 = vmatprep.subr.mxu0 %v45_v0  ;;  %v40_v2 = vld [vmem:[#allocation2] sm:$0xff]  ;;  %v43_v3 = vld [vmem:[#allocation5 + $0x8] sm:$0xff]  ;;  %v42_v4 = vld [vmem:[#allocation5] sm:$0xff]  ;;  %s243_s0 = smov [#allocation7]  }
  0x1e   :  { %158 = vmatpush3.msra.mxu0 %v45_v0  ;;  %165 = vmatprep.mubr.msk.f32.mxu0 %vm46_vm0, %v40_v2  ;;  %v41_v5 = vld [vmem:[#allocation2 + $0x8] sm:$0xff]  ;;  %s136_s1 = sshll.u32 %s243_s0, 4  ;;  %s137_s1 = int_to_ptr.vmem [resolvable:$true] %s136_s1 }
  0x1f   :  { %159 = vmatprep.subr.mxu0 %v44_v1  ;;  %s213_s21 = scalar_lea.vmem %s137_s1, 256  ;;  %p218_p11 = scmp.lt.s32.totalorder %s137_s1, %s137_s1 }
  0x20   :  { %160 = vmatpush3.msra.mxu0 %v44_v1  ;;  %p214_p10 = scmp.ne.s32.totalorder %s137_s1, %s213_s21  ;;  %p219_p12 = scmp.lt.s32.totalorder %s213_s21, %s213_s21 }
  0x21   :  { %161 = vmatprep.subr.mxu0 %v43_v3 }
  0x22   :  { %162 = vmatpush3.msra.mxu0 %v43_v3  ;;  %p220_p13 = por %p219_p12, %p218_p11 }
  0x23   :  { %163 = vmatprep.subr.mxu0 %v42_v4 }
  0x24   :  { %164 = vmatpush3.msra.mxu0 %v42_v4  ;;  %p221_p0 = pnand %p220_p13, %p214_p10 }
  0x25   :  { %166 = vmatmul.mubr.msk.f32.vlgmr.msra.gmra.mxu0 %vm46_vm0, %v41_v5 }
  0xe5   :  { %v167_v6 = vpop.f32.mrf.mxu0 }
  0xe6   :  { %130 = vst.msk [vmem:[#allocation7 + $0x8] sm:$0xff] %vm128_vm1, %v167_v6 }
  0xe7   :  { %v119_v7 = vpop.f32.mrf.mxu0 }
  0xe8   :  { %129 = vst.msk [vmem:[#allocation7] sm:$0xff] %vm128_vm1, %v119_v7 }
  0xe9   :  { %224 = shalt.err (!%p221_p0)
}
  0xea   :  { %142 = dma.vmem_to_hbm [thread:$0]  %s137_s1, 256, %s281_s2, [#allocation4], %s240_s12, %s240_s12, %s241_s13  }
  0xeb   :  { %237 = dma.done.wait [#allocation4], 256  }
  0xec   :  { %238 = vsyncadd [#allocation4], 4294967040 }
  0xed   :  { %146 = vsyncpa [#allocation3], 1 }
  0xee   :  { %147 = vsyncpa [#allocation6], 1 }
  0xef   :  { %148 = vsyncpa [#allocation4], 1 }

</bundles_post_ra>
